<compile_context>
chip_gen: v7x
topology: tpu7x:2x2x1
jax: 0.10.0
libtpu: 0.0.40
codegen_flags: <defaults>
</compile_context>

<pallas_src>
import math

import jax
import jax.numpy as jnp
from jax.experimental import pallas as pl
from jax.experimental.pallas import tpu as pltpu


def sparse_layer_kernel(self_ref, neigh_ref, w_self_ref, w_neigh_ref, o_ref):
    """out_tile = self_tile @ W_s + neigh_tile @ W_n  (f32 MXU accumulation).

    W_s = W/(K+1), W_n = tile(W, (K, 1))/(K+1) are pre-scaled wrapper-side, so
    this pair of dots implements mean(concat([self@W, neigh@W], 1), 1).
    Inputs are loaded in their HBM dtype and cast to the weight dtype in-VMEM.
    """
    cd = w_self_ref.dtype
    acc = jnp.dot(self_ref[...].astype(cd), w_self_ref[...],
                  preferred_element_type=jnp.float32)
    acc = acc + jnp.dot(neigh_ref[...].astype(cd), w_neigh_ref[...],
                        preferred_element_type=jnp.float32)
    o_ref[...] = acc.astype(o_ref.dtype)


def _tpu_vmem_capacity_bytes():
    try:
        cap = getattr(pltpu.get_tpu_info(), "vmem_capacity_bytes", None)
        if cap:
            return int(cap)
    except Exception:
        pass
    return 64 * 1024 * 1024  # conservative default (v7x per-TC)


def _pick_tile_n(n, fin, kfin, fout, in_bytes, out_bytes, w_bytes,
                 budget_bytes, max_tile):
    """Node-tile rows under a VMEM budget: multiple of 8, or the full N."""
    per_row = 2 * (fin + kfin) * in_bytes + 2 * fout * out_bytes  # dbl-buffered
    fixed = 2 * (fin + kfin) * fout * w_bytes                     # resident W
    tile_n = max(8, min((budget_bytes - fixed) // max(per_row, 1), max_tile, n))
    if tile_n < n:
        tile_n -= tile_n % 8          # (8, 128) sublane constraint for partial tiling
        tile_n = max(tile_n, 8)
    else:
        tile_n = n                    # full-dim block is always legal
    return int(tile_n)


def sparse_layer(self_vecs, neigh_vecs, neigh_num, weight, bias=None, *,
                 compute_dtype=jnp.bfloat16, tile_n=None):
    n, fin = self_vecs.shape
    fout = weight.shape[1]
    k = int(neigh_num)
    kfin = k * fin
    out_dtype = self_vecs.dtype

    # Pack each node's K neighbours along the lane axis: [N, K*Fin] (no copy).
    neigh2 = neigh_vecs.reshape(n, kfin)

    # Tiny once-per-call weight prep: fold the 1/(K+1) mean scale in, stack the
    # K neighbour copies, cast to the compute dtype.  (Only the weights are
    # cast wrapper-side; the streamed activations stay in their HBM dtype.)
    cd = jnp.dtype(compute_dtype) if compute_dtype is not None else jnp.dtype(out_dtype)
    w_self = (weight.astype(jnp.float32) * (1.0 / (k + 1))).astype(cd)  # [Fin, Fout]
    w_neigh = jnp.tile(w_self, (k, 1))                                  # [K*Fin, Fout]

    in_b = jnp.dtype(self_vecs.dtype).itemsize
    out_b = jnp.dtype(out_dtype).itemsize
    w_b = cd.itemsize

    cap = _tpu_vmem_capacity_bytes()
    if cap >= 100 * 1024 * 1024:          # v5e / v6e: 128 MiB VMEM, 1 TensorCore
        budget, max_tile, two_tc = 28 * 1024 * 1024, 2048, False
    else:                                 # v7x: 64 MiB VMEM, 2 TensorCores
        budget, max_tile, two_tc = 12 * 1024 * 1024, 1024, True

    if tile_n is None:
        tile_n = _pick_tile_n(n, fin, kfin, fout, in_b, out_b, w_b,
                              budget, max_tile)
    # v7x: guarantee >= 2 node tiles once N is big enough so both TCs get work.
    if two_tc and n >= 16:
        half = ((pl.cdiv(n, 2) + 7) // 8) * 8
        tile_n = min(tile_n, max(8, half))

    # Scoped VMEM ~2x the real working-set estimate, small floor for Mosaic
    # internals, capped well below physical VMEM on every generation.
    est = (2 * tile_n * (fin + kfin) * in_b      # double-buffered input tiles
           + 2 * tile_n * fout * out_b           # double-buffered output tile
           + 2 * (fin + kfin) * fout * w_b)      # resident weights
    vmem_limit = int(min(max(2 * est, 8 * 1024 * 1024), (cap * 3) // 4))

    if tile_n >= n:
        # Small-problem fast path: no grid, whole arrays as single VMEM blocks.
        out = pl.pallas_call(
            sparse_layer_kernel,
            out_shape=jax.ShapeDtypeStruct((n, fout), out_dtype),
            compiler_params=pltpu.CompilerParams(vmem_limit_bytes=vmem_limit),
        )(self_vecs, neigh2, w_self, w_neigh)
    else:
        out = pl.pallas_call(
            sparse_layer_kernel,
            out_shape=jax.ShapeDtypeStruct((n, fout), out_dtype),
            grid_spec=pltpu.PrefetchScalarGridSpec(
                num_scalar_prefetch=0,
                grid=(pl.cdiv(n, tile_n),),
                in_specs=[
                    pl.BlockSpec((tile_n, fin), lambda i: (i, 0)),
                    pl.BlockSpec((tile_n, kfin), lambda i: (i, 0)),
                    # Constant block index: tiny weights DMA'd once, resident
                    # for the whole call (no per-step weight re-fetch).
                    pl.BlockSpec((fin, fout), lambda i: (0, 0)),
                    pl.BlockSpec((kfin, fout), lambda i: (0, 0)),
                ],
                out_specs=pl.BlockSpec((tile_n, fout), lambda i: (i, 0)),
            ),
            compiler_params=pltpu.CompilerParams(
                dimension_semantics=("parallel",),  # independent node tiles
                vmem_limit_bytes=vmem_limit,
            ),
        )(self_vecs, neigh2, w_self, w_neigh)

    if bias is not None:                  # module default is bias=False
        out = out + bias.astype(out_dtype)
    return out


def _reference(self_vecs, neigh_vecs, k, weight):
    h_self = self_vecs @ weight
    h_neigh = (neigh_vecs @ weight).reshape(self_vecs.shape[0], k, weight.shape[1])
    return jnp.mean(jnp.concatenate([h_self[:, None, :], h_neigh], axis=1), axis=1)


if __name__ == "__main__":
    # Small shapes consistent with the module's forward.
    N, K, FIN, FOUT = 8, 4, 32, 32

    key = jax.random.PRNGKey(0)
    k_self, k_neigh, k_w, k_self2, k_neigh2 = jax.random.split(key, 5)

    self_vecs = jax.random.normal(k_self, (N, FIN), dtype=jnp.float32)
    neigh_vecs = jax.random.normal(k_neigh, (N * K, FIN), dtype=jnp.float32)

    # xavier_uniform_ init (gain=1): U(-a, a), a = sqrt(6 / (fan_in + fan_out))
    bound = math.sqrt(6.0 / (FIN + FOUT))
    weight = jax.random.uniform(k_w, (FIN, FOUT), dtype=jnp.float32,
                                minval=-bound, maxval=bound)

    ref = _reference(self_vecs, neigh_vecs, K, weight)

    # f32 compute path (small-problem fast path: no grid).
    out_f32 = jax.block_until_ready(
        sparse_layer(self_vecs, neigh_vecs, K, weight, compute_dtype=jnp.float32))
    assert out_f32.shape == (N, FOUT)
    assert jnp.allclose(out_f32, ref, atol=1e-4, rtol=1e-4), "f32 mismatch vs reference"

    # Default bf16-compute / f32-accumulate path.
    out_bf16 = jax.block_until_ready(sparse_layer(self_vecs, neigh_vecs, K, weight))
    assert out_bf16.shape == (N, FOUT)
    assert jnp.allclose(out_bf16, ref, atol=5e-2, rtol=5e-2), "bf16 mismatch vs reference"

    # Exercise the tiled (gridded) path, including a partial final node tile.
    N2 = 40
    self2 = jax.random.normal(k_self2, (N2, FIN), dtype=jnp.float32)
    neigh2 = jax.random.normal(k_neigh2, (N2 * K, FIN), dtype=jnp.float32)
    ref2 = _reference(self2, neigh2, K, weight)
    out_tiled = jax.block_until_ready(
        sparse_layer(self2, neigh2, K, weight, compute_dtype=jnp.float32, tile_n=16))
    assert out_tiled.shape == (N2, FOUT)
    assert jnp.allclose(out_tiled, ref2, atol=1e-4, rtol=1e-4), "tiled mismatch vs reference"

    print("KERNEL_OK")
</pallas_src>

<mosaic_0001>
module attributes {stable_mosaic.version = 11 : i64} {
  func.func @sparse_layer_kernel(%arg0: memref<8x32xf32, #tpu.memory_space<vmem>>, %arg1: memref<8x128xf32, #tpu.memory_space<vmem>>, %arg2: memref<32x32xf32, #tpu.memory_space<vmem>>, %arg3: memref<128x32xf32, #tpu.memory_space<vmem>>, %arg4: memref<8x32xf32, #tpu.memory_space<vmem>>) attributes {dimension_semantics = [], scalar_prefetch = 0 : i64, scratch_operands = 0 : i64, tpu.core_type = #tpu.core_type<tc>} {
    %c0 = arith.constant 0 : index
    %c0_0 = arith.constant 0 : index
    %0 = vector.load %arg0[%c0, %c0_0] : memref<8x32xf32, #tpu.memory_space<vmem>>, vector<8x32xf32>
    %c0_1 = arith.constant 0 : index
    %c0_2 = arith.constant 0 : index
    %1 = vector.load %arg2[%c0_1, %c0_2] : memref<32x32xf32, #tpu.memory_space<vmem>>, vector<32x32xf32>
    %cst = arith.constant dense<0.000000e+00> : vector<8x32xf32>
    %2 = tpu.matmul %0, %1, %cst {dimension_numbers = #tpu.dot_dimension_numbers<[1], [0], [0], [1], [0, 0, 1, 1], [], []>} : vector<8x32xf32>, vector<32x32xf32>, vector<8x32xf32> -> vector<8x32xf32>
    %c0_3 = arith.constant 0 : index
    %c0_4 = arith.constant 0 : index
    %3 = vector.load %arg1[%c0_3, %c0_4] : memref<8x128xf32, #tpu.memory_space<vmem>>, vector<8x128xf32>
    %c0_5 = arith.constant 0 : index
    %c0_6 = arith.constant 0 : index
    %4 = vector.load %arg3[%c0_5, %c0_6] : memref<128x32xf32, #tpu.memory_space<vmem>>, vector<128x32xf32>
    %cst_7 = arith.constant dense<0.000000e+00> : vector<8x32xf32>
    %5 = tpu.matmul %3, %4, %cst_7 {dimension_numbers = #tpu.dot_dimension_numbers<[1], [0], [0], [1], [0, 0, 1, 1], [], []>} : vector<8x128xf32>, vector<128x32xf32>, vector<8x32xf32> -> vector<8x32xf32>
    %6 = arith.addf %2, %5 : vector<8x32xf32>
    %c0_8 = arith.constant 0 : index
    %c0_9 = arith.constant 0 : index
    %7 = vector.load %arg4[%c0_8, %c0_9] : memref<8x32xf32, #tpu.memory_space<vmem>>, vector<8x32xf32>
    tpu.vector_store %arg4[%c0_8, %c0_9], %6 {strides = array<i32>} : memref<8x32xf32, #tpu.memory_space<vmem>>, vector<8x32xf32>,
    return
  }
}

</mosaic_0001>

<bundles_post_ra>
// kernel: tpu_custom_call.1
= control target key start
LH: loop header
LB: loop body
LE: loop exit
PB: predicated region body
PF: predicated region fallthrough
CT: control target
= control target key end

     0   :  { %v327_v3 = vmov 0.0|0.0   ;;  %vm328_vm0 = vmmov 0   ;;  %v329_v6 = vmov 0.0   ;;  %s436_s0 = inlined_call_operand.vmem [shape: f32[8,32], index: 0, kind: input, shape index: {}]   ;;  %s437_s1 = inlined_call_operand.vmem [shape: f32[8,128], index: 1, kind: input, shape index: {}]   ;;  %s438_s2 = inlined_call_operand.vmem [shape: f32[32,32], index: 2, kind: input, shape index: {}]   ;;  %s439_s3 = inlined_call_operand.vmem [shape: f32[128,32], index: 3, kind: input, shape index: {}]   ;;  %s440_s4 = inlined_call_operand.hbm [shape: f32[8,32], index: 4, kind: output, shape index: {}]  }
   0x1   :  { %v24_v0 = vld [vmem:[%s439_s3] sm:$0xff]  ;;  %v25_v1 = vld [vmem:[%s439_s3 + $0x8] sm:$0xff]  ;;  %v26_v2 = vld [vmem:[%s439_s3 + $0x10] sm:$0xff]  ;;  %268 = vmatprep.subr.bf16.mxu1 %v327_v3  ;;  %292 = vmatprep.subr.bf16.mxu0 %v327_v3 }
   0x2   :  { %v269_v4 = vpack.c.bf16 %v25_v1, %v24_v0  ;;  %v27_v5 = vld [vmem:[%s439_s3 + $0x18] sm:$0xff]  ;;  %265 = vmatprep.mubr.msk.f32.mxu0 %vm328_vm0, %v329_v6  ;;  %254 = vmatprep.mubr.msk.f32.mxu1 %vm328_vm0, %v329_v6  ;;  %v28_v8 = vld [vmem:[%s439_s3 + $0x20] sm:$0xff]  ;;  %v29_v9 = vld [vmem:[%s439_s3 + $0x28] sm:$0xff] }
   0x3   :  { %v272_v7 = vpack.c.bf16 %v27_v5, %v26_v2  ;;  %v19_v10 = vld [vmem:[%s438_s2] sm:$0xff]  ;;  %v20_v11 = vld [vmem:[%s438_s2 + $0x8] sm:$0xff]  ;;  %v21_v13 = vld [vmem:[%s438_s2 + $0x10] sm:$0xff]  ;;  %v275_v15 = vpack.c.bf16 %v29_v9, %v28_v8 }
   0x4   :  { %270 = vmatpush3.bf16.msra.mxu1 %v269_v4  ;;  %v293_v12 = vpack.c.bf16 %v20_v11, %v19_v10  ;;  %v22_v14 = vld [vmem:[%s438_s2 + $0x18] sm:$0xff] }
   0x5   :  { %271 = vmatprep.subr.bf16.mxu1 %v327_v3  ;;  %v296_v16 = vpack.c.bf16 %v22_v14, %v21_v13 }
   0x6   :  { %294 = vmatpush3.bf16.msra.mxu0 %v293_v12 }
   0x8   :  { %273 = vmatpush3.bf16.msra.mxu1 %v272_v7 }
   0x9   :  { %9 = vsyncpa [#allocation3], 0  ;;  %274 = vmatprep.subr.bf16.mxu1 %v327_v3  ;;  %v30_v17 = vld [vmem:[%s439_s3 + $0x30] sm:$0xff]  ;;  %v31_v18 = vld [vmem:[%s439_s3 + $0x38] sm:$0xff]  ;;  %295 = vmatprep.subr.bf16.mxu0 %v327_v3  ;;  %vm110_vm1 = vcmask 261120   ;;  %s330_s5 = smov [#allocation2]  }
   0xa   :  { %v278_v19 = vpack.c.bf16 %v31_v18, %v30_v17  ;;  %297 = vmatpush3.bf16.msra.mxu0 %v296_v16  ;;  %v18_v20 = vld [vmem:[%s436_s0] sm:$0xff]  ;;  %v33_v22 = vld [vmem:[%s439_s3 + $0x48] sm:$0xff]  ;;  %v34_v24 = vld [vmem:[%s439_s3 + $0x50] sm:$0xff]  ;;  %s191_s6 = sshll.u32 %s330_s5, 4  ;;  %s192_s6 = int_to_ptr.vmem [resolvable:$true] %s191_s6 }
   0xb   :  { %v32_v21 = vld [vmem:[%s439_s3 + $0x40] sm:$0xff]  ;;  %v35_v25 = vld [vmem:[%s439_s3 + $0x58] sm:$0xff]  ;;  %v37_v28 = vld [vmem:[%s439_s3 + $0x68] sm:$0xff]  ;;  %p308_p1 = scmp.lt.s32.totalorder %s192_s6, %s192_s6 }
   0xc   :  { %276 = vmatpush3.bf16.msra.mxu1 %v275_v15  ;;  %v281_v23 = vpack.c.bf16 %v33_v22, %v32_v21  ;;  %v284_v26 = vpack.c.bf16 %v35_v25, %v34_v24  ;;  %v36_v27 = vld [vmem:[%s439_s3 + $0x60] sm:$0xff]  ;;  %v38_v30 = vld [vmem:[%s439_s3 + $0x70] sm:$0xff]  ;;  %v39_v31 = vld [vmem:[%s439_s3 + $0x78] sm:$0xff]  ;;  %s303_s3 = scalar_lea.vmem %s192_s6, 128 }
   0xd   :  { %277 = vmatprep.subr.bf16.mxu1 %v327_v3  ;;  %266 = vmatmul.mubr.msk.f32.vlgmr.msra.gmra.mrb[0].mxu0 %vm110_vm1, %v18_v20  ;;  %v287_v29 = vpack.c.bf16 %v37_v28, %v36_v27  ;;  %v290_v32 = vpack.c.bf16 %v39_v31, %v38_v30  ;;  %v23_v33 = vld [vmem:[%s437_s1] sm:$0xff]  ;;  %p304_p0 = scmp.ne.s32.totalorder %s192_s6, %s303_s3  ;;  %p309_p2 = scmp.lt.s32.totalorder %s303_s3, %s303_s3 }
   0xf   :  { %p310_p3 = por %p309_p2, %p308_p1 }
  0x10   :  { %279 = vmatpush3.bf16.msra.mxu1 %v278_v19 }
  0x11   :  { %280 = vmatprep.subr.bf16.mxu1 %v327_v3  ;;  %p311_p4 = pnand %p310_p3, %p304_p0 }
  0x14   :  { %282 = vmatpush3.bf16.msra.mxu1 %v281_v23 }
  0x15   :  { %283 = vmatprep.subr.bf16.mxu1 %v327_v3 }
  0x18   :  { %285 = vmatpush3.bf16.msra.mxu1 %v284_v26 }
  0x19   :  { %286 = vmatprep.subr.bf16.mxu1 %v327_v3 }
  0x1c   :  { %288 = vmatpush3.bf16.msra.mxu1 %v287_v29 }
  0x1d   :  { %289 = vmatprep.subr.bf16.mxu1 %v327_v3 }
  0x20   :  { %291 = vmatpush3.bf16.msra.mxu1 %v290_v32 }
  0x23   :  { %255 = vmatmul.mubr.f32.vlgmr.msra.gmra.mrb[0].mxu1 %v23_v33 }
  0xe0   :  { %v180_v34 = vpop.f32.mrb[0].mxu0 }
  0xe1   :  { %v267_v35 = vpop.f32.mrb[1].mxu0 }
  0xf6   :  { %v106_v36 = vpop.f32.mrb[0].mxu1 }
  0xf7   :  { %v181_v37 = vadd.f32 %v180_v34, %v106_v36  ;;  %v256_v38 = vpop.f32.mrb[1].mxu1 }
  0xf9   :  { %184 = vst.msk [vmem:[#allocation2] sm:$0xff] %vm110_vm1, %v181_v37 }
  0xfa   :  { %314 = shalt.err (!%p311_p4)
}
  0xfb   :  { %s315_s8 = scalar_lea.hbm %s440_s4, 128 }
  0xfc   :  { %p316_p5 = scmp.ne.s32.totalorder %s440_s4, %s315_s8  ;;  %p319_p6 = scmp.lt.u32.totalorder %s315_s8, %s440_s4 }
  0xfe   :  { %p321_p7 = pnand %p319_p6, %p316_p5 }
 0x100   :  { %324 = shalt.err (!%p321_p7)
}
 0x101   :  { %194 = dma.vmem_to_hbm [thread:$0]  %s192_s6, 128, %s440_s4, [#allocation3]  }
 0x102   :  { %325 = dma.done.wait [#allocation3], 128  }
 0x103   :  { %326 = vsyncadd [#allocation3], 4294967168 }
 0x104   :  { %198 = vsyncpa [#allocation3], 1 }

</bundles_post_ra>
